<compile_context>
chip_gen: v7x
topology: tpu7x:2x2x1
jax: 0.10.0
libtpu: 0.0.40
codegen_flags: <defaults>
</compile_context>

<pallas_src>
import functools

import jax
import jax.numpy as jnp
from jax.experimental import pallas as pl
from jax.experimental.pallas import tpu as pltpu


def _film_kernel(g_ref, b_ref, x_ref, o_ref, *, compute_dtype):
    # g_ref/b_ref: (tr, 1)   x_ref/o_ref: (tr, thw)
    gamma = g_ref[...].astype(compute_dtype)
    beta = b_ref[...].astype(compute_dtype)
    x = x_ref[...].astype(compute_dtype)
    o_ref[...] = ((1.0 + gamma) * x + beta).astype(o_ref.dtype)


def _largest_tile(dim, unit, cap):
    """Largest tile <= cap: the full dim if it fits, else a multiple of `unit`."""
    if dim <= cap:
        return dim
    return max(unit, (cap // unit) * unit)


def _vmem_budget():
    """(vmem_limit_bytes, tile_budget_bytes), generation-aware with safe fallback."""
    try:
        vmem_cap = int(pltpu.get_tpu_info().vmem_capacity_bytes)
    except Exception:
        vmem_cap = 64 * 1024 * 1024  # conservative (v7x-sized) fallback
    # Use at most half the physical per-core VMEM, clamped to [32, 96] MiB:
    # v5e/v6e (128 MiB) -> 64 MiB limit, v7x (64 MiB) -> 32 MiB limit.
    vmem_limit = max(32 * 1024 * 1024, min(vmem_cap // 2, 96 * 1024 * 1024))
    tile_budget = int(vmem_limit * 0.8)
    return vmem_limit, tile_budget


def _pick_tiles(nrows, ncols, itemsize, tile_budget):
    """Grow (tr, thw) up to (512, 8192); shrink until 2 in + 2 out buffers fit."""
    tr = _largest_tile(nrows, 8, 512)
    thw = _largest_tile(ncols, 128, 8192)

    def cost(r, cw):
        return 4 * r * cw * itemsize  # double-buffered input + output tiles

    while cost(tr, thw) > tile_budget:
        if thw > 4096:
            thw = _largest_tile(ncols, 128, max(128, thw // 2))
        elif tr > 128:
            tr = _largest_tile(nrows, 8, max(8, tr // 2))
        elif thw > 128:
            thw = _largest_tile(ncols, 128, max(128, thw // 2))
        elif tr > 8:
            tr = _largest_tile(nrows, 8, max(8, tr // 2))
        else:
            break
    return tr, thw


def film_layer(feature_maps, context, weight, bias=None, activation=None):
    """Pallas implementation of FilmLayer.forward.

    feature_maps: (N, C, H, W)
    context:      (N, L)
    weight:       (2*C, L)  -- PyTorch nn.Linear layout for out_planes = 2*C
    bias:         (2*C,) or None
    activation:   None | 'relu' | 'tanh'  (FilmLayer always uses None)
    """
    # TODO(synk): the PyTorch module re-creates and re-initializes its nn.Linear
    # (xavier_uniform weight, constant-0.1 bias) on every forward call; here the
    # weight/bias are explicit, fixed inputs instead of per-call random state.
    n, c, h, w = feature_maps.shape
    hw = h * w
    l = context.shape[-1]
    assert weight.shape == (2 * c, l), "weight must be (2*C, L)"

    # --- Hoisted projection (tiny, runs once per batch row in plain XLA) ---
    film = jnp.dot(
        context.astype(jnp.float32),
        weight.astype(jnp.float32).T,
        preferred_element_type=jnp.float32,
    )  # (N, 2C) f32
    if bias is not None:
        film = film + bias.astype(jnp.float32)
    if activation == "relu":
        film = jnp.maximum(film, 0.0)
    elif activation == "tanh":
        film = jnp.tanh(film)

    gamma = film[:, :c].reshape(n * c, 1)  # (N*C, 1) f32
    beta = film[:, c:].reshape(n * c, 1)   # (N*C, 1) f32

    # --- Memory-bound modulation as the Pallas kernel ---
    x2 = feature_maps.reshape(n * c, hw)
    nrows = n * c
    itemsize = jnp.dtype(feature_maps.dtype).itemsize

    vmem_limit, tile_budget = _vmem_budget()
    tr, thw = _pick_tiles(nrows, hw, itemsize, tile_budget)
    grid = (pl.cdiv(nrows, tr), pl.cdiv(hw, thw))

    # bf16 inputs stay in bf16 (bf16 VALU on v6e/v7x); f32 inputs use f32 math.
    compute_dtype = (
        jnp.float32 if feature_maps.dtype == jnp.float32 else feature_maps.dtype
    )
    kernel = functools.partial(_film_kernel, compute_dtype=compute_dtype)

    out2 = pl.pallas_call(
        kernel,
        out_shape=jax.ShapeDtypeStruct((nrows, hw), feature_maps.dtype),
        grid_spec=pltpu.PrefetchScalarGridSpec(
            num_scalar_prefetch=0,
            grid=grid,
            in_specs=[
                pl.BlockSpec((tr, 1), lambda ri, hi: (ri, 0)),    # gamma rows
                pl.BlockSpec((tr, 1), lambda ri, hi: (ri, 0)),    # beta rows
                pl.BlockSpec((tr, thw), lambda ri, hi: (ri, hi)), # feature tile
            ],
            out_specs=pl.BlockSpec((tr, thw), lambda ri, hi: (ri, hi)),
        ),
        compiler_params=pltpu.CompilerParams(
            dimension_semantics=("parallel", "parallel"),
            vmem_limit_bytes=vmem_limit,
        ),
    )(gamma, beta, x2)

    return out2.reshape(n, c, h, w)


def _xavier_uniform(key, fan_out, fan_in):
    # Matches torch.nn.init.xavier_uniform_ (gain=1).
    bound = (6.0 / (fan_in + fan_out)) ** 0.5
    return jax.random.uniform(
        key, (fan_out, fan_in), dtype=jnp.float32, minval=-bound, maxval=bound
    )


if __name__ == "__main__":
    # Small shapes consistent with FilmLayer: feature_maps (N, C, H, W),
    # context (N, L).
    N, C, H, W = 2, 16, 16, 16
    L = 32

    key = jax.random.PRNGKey(0)
    k_fm, k_ctx, k_w = jax.random.split(key, 3)

    feature_maps = jax.random.normal(k_fm, (N, C, H, W), dtype=jnp.float32)
    context = jax.random.normal(k_ctx, (N, L), dtype=jnp.float32)
    # DynamicFC inside FilmLayer: Linear(L -> 2*C), xavier_uniform weight,
    # constant-0.1 bias, activation=None.
    weight = _xavier_uniform(k_w, 2 * C, L)
    bias = jnp.full((2 * C,), 0.1, dtype=jnp.float32)

    out = film_layer(feature_maps, context, weight, bias, activation=None)
    out = jax.block_until_ready(out)

    # Pure-JAX reference.
    film_params = jnp.matmul(context, weight.T, precision="highest") + bias  # (N, 2C)
    gammas = film_params[:, :C][:, :, None, None]
    betas = film_params[:, C:][:, :, None, None]
    ref = (1.0 + gammas) * feature_maps + betas

    assert out.shape == (N, C, H, W)
    assert jnp.allclose(out, ref, atol=1e-5, rtol=1e-5), float(
        jnp.max(jnp.abs(out - ref))
    )
    print("KERNEL_OK")
</pallas_src>

<mosaic_0001>
module attributes {stable_mosaic.version = 11 : i64} {
  func.func @_film_kernel(%arg0: i32, %arg1: i32, %arg2: memref<32x1xf32, #tpu.memory_space<vmem>>, %arg3: memref<32x1xf32, #tpu.memory_space<vmem>>, %arg4: memref<32x256xf32, #tpu.memory_space<vmem>>, %arg5: memref<32x256xf32, #tpu.memory_space<vmem>>) attributes {dimension_semantics = [#tpu.dimension_semantics<parallel>, #tpu.dimension_semantics<parallel>], iteration_bounds = array<i64: 1, 1>, scalar_prefetch = 0 : i64, scratch_operands = 0 : i64, tpu.core_type = #tpu.core_type<tc>, window_params = [{transform_indices = @transform_0, window_bounds = array<i64: 32, 1>}, {transform_indices = @transform_1, window_bounds = array<i64: 32, 1>}, {transform_indices = @transform_2, window_bounds = array<i64: 32, 256>}, {transform_indices = @transform_3, window_bounds = array<i64: 32, 256>}]} {
    %c0 = arith.constant 0 : index
    %c0_0 = arith.constant 0 : index
    %0 = vector.load %arg2[%c0, %c0_0] : memref<32x1xf32, #tpu.memory_space<vmem>>, vector<32x1xf32>
    %c0_1 = arith.constant 0 : index
    %c0_2 = arith.constant 0 : index
    %1 = vector.load %arg3[%c0_1, %c0_2] : memref<32x1xf32, #tpu.memory_space<vmem>>, vector<32x1xf32>
    %c0_3 = arith.constant 0 : index
    %c0_4 = arith.constant 0 : index
    %2 = vector.load %arg4[%c0_3, %c0_4] : memref<32x256xf32, #tpu.memory_space<vmem>>, vector<32x256xf32>
    %cst = arith.constant 1.000000e+00 : f32
    %3 = vector.broadcast %cst : f32 to vector<32x1xf32>
    %4 = arith.addf %3, %0 : vector<32x1xf32>
    %5 = vector.broadcast %4 : vector<32x1xf32> to vector<32x256xf32>
    %6 = arith.mulf %5, %2 : vector<32x256xf32>
    %7 = vector.broadcast %1 : vector<32x1xf32> to vector<32x256xf32>
    %8 = arith.addf %6, %7 : vector<32x256xf32>
    %c0_5 = arith.constant 0 : index
    %c0_6 = arith.constant 0 : index
    %9 = vector.load %arg5[%c0_5, %c0_6] : memref<32x256xf32, #tpu.memory_space<vmem>>, vector<32x256xf32>
    tpu.vector_store %arg5[%c0_5, %c0_6], %8 {strides = array<i32>} : memref<32x256xf32, #tpu.memory_space<vmem>>, vector<32x256xf32>,
    return
  }
  func.func @transform_0(%arg0: i32, %arg1: i32) -> (i32, i32) {
    %c0_i32 = arith.constant 0 : i32
    %c0_i32_0 = arith.constant 0 : i32
    return %arg0, %c0_i32 : i32, i32
  }
  func.func @transform_1(%arg0: i32, %arg1: i32) -> (i32, i32) {
    %c0_i32 = arith.constant 0 : i32
    %c0_i32_0 = arith.constant 0 : i32
    return %arg0, %c0_i32 : i32, i32
  }
  func.func @transform_2(%arg0: i32, %arg1: i32) -> (i32, i32) {
    %c0_i32 = arith.constant 0 : i32
    return %arg0, %arg1 : i32, i32
  }
  func.func @transform_3(%arg0: i32, %arg1: i32) -> (i32, i32) {
    %c0_i32 = arith.constant 0 : i32
    return %arg0, %arg1 : i32, i32
  }
}

</mosaic_0001>

<bundles_post_ra>
// kernel: tpu_custom_call.1
= control target key start
LH: loop header
LB: loop body
LE: loop exit
PB: predicated region body
PF: predicated region fallthrough
CT: control target
= control target key end

     0   :  { %v145_v3 = vmov 0   ;;  %s229_s0 = inlined_call_operand.vmem [shape: f32[32,1], index: 0, kind: input, shape index: {}]   ;;  %s230_s1 = inlined_call_operand.vmem [shape: f32[32,1], index: 1, kind: input, shape index: {}]   ;;  %s231_s2 = inlined_call_operand.vmem [shape: f32[32,256], index: 2, kind: input, shape index: {}]   ;;  %s232_s3 = inlined_call_operand.hbm [shape: f32[32,256], index: 3, kind: output, shape index: {}]  }
   0x1   :  { %v17_v0 = vld [vmem:[%s229_s0 + $0x10] sm:$0xff]  ;;  %v15_v1 = vld [vmem:[%s229_s0] sm:$0xff]  ;;  %v18_v2 = vld [vmem:[%s229_s0 + $0x18] sm:$0xff]  ;;  %120 = vset.pattern.permute.xlu1 %v145_v3  ;;  %119 = vset.pattern.permute.xlu0 %v145_v3 }
   0x2   :  { %v33_v4 = vadd.f32 1.0, %v17_v0  ;;  %v31_v5 = vadd.f32 1.0, %v15_v1  ;;  %v16_v6 = vld [vmem:[%s229_s0 + $0x8] sm:$0xff]  ;;  %v34_v7 = vadd.f32 1.0, %v18_v2 }
   0x3   :  { %v32_v8 = vadd.f32 1.0, %v16_v6 }
   0x4   :  { %47 = vperm.xlu1 %120, %v33_v4   ;;  %37 = vperm.xlu0 %119, %v31_v5  }
   0x5   :  { %8 = vsyncpa [#allocation3], 0  ;;  %v20_v9 = vld [vmem:[%s230_s1 + $0x8] sm:$0xff]  ;;  %v19_v10 = vld [vmem:[%s230_s1] sm:$0xff]  ;;  %s146_s15 = smov [#allocation2]  }
   0x6   :  { %v22_v11 = vld [vmem:[%s230_s1 + $0x18] sm:$0xff]  ;;  %v21_v12 = vld [vmem:[%s230_s1 + $0x10] sm:$0xff]  ;;  %v23_v15 = vld [vmem:[%s231_s2] sm:$0xff]  ;;  %s104_s16 = sshll.u32 %s146_s15, 4  ;;  %s105_s16 = int_to_ptr.vmem [resolvable:$true] %s104_s16 }
   0x7   :  { %v24_v16 = vld [vmem:[%s231_s2 + $0x8] sm:$0xff]  ;;  %v25_v18 = vld [vmem:[%s231_s2 + $0x10] sm:$0xff]  ;;  %v26_v19 = vld [vmem:[%s231_s2 + $0x18] sm:$0xff]  ;;  %p126_p1 = scmp.lt.s32.totalorder %s105_s16, %s105_s16 }
   0x8   :  { %52 = vperm.xlu1 %120, %v34_v7   ;;  %42 = vperm.xlu0 %119, %v32_v8   ;;  %v27_v21 = vld [vmem:[%s231_s2 + $0x20] sm:$0xff]  ;;  %v28_v26 = vld [vmem:[%s231_s2 + $0x28] sm:$0xff]  ;;  %v29_v27 = vld [vmem:[%s231_s2 + $0x30] sm:$0xff] }
   0x9   :  { %v30_v28 = vld [vmem:[%s231_s2 + $0x38] sm:$0xff]  ;;  %s121_s2 = scalar_lea.vmem %s105_s16, 1024 }
   0xa   :  { %p122_p0 = scmp.ne.s32.totalorder %s105_s16, %s121_s2  ;;  %p127_p2 = scmp.lt.s32.totalorder %s121_s2, %s121_s2 }
   0xc   :  { %70 = vperm.xlu1 %120, %v20_v9   ;;  %65 = vperm.xlu0 %119, %v19_v10   ;;  %p128_p3 = por %p127_p2, %p126_p1 }
   0xe   :  { %p129_p4 = pnand %p128_p3, %p122_p0 }
  0x10   :  { %80 = vperm.xlu1 %120, %v22_v11   ;;  %75 = vperm.xlu0 %119, %v21_v12  }
  0x83   :  { %v48_v13 = vpop.permute.xlu1 %47  ;;  %v38_v14 = vpop.permute.xlu0 %37 }
  0x84   :  { %v55_v22 = vmul.f32 %v38_v14, %v23_v15  ;;  %v56_v23 = vmul.f32 %v38_v14, %v24_v16  ;;  %v59_v35 = vmul.f32 %v48_v13, %v27_v21  ;;  %v60_v36 = vmul.f32 %v48_v13, %v28_v26 }
  0x87   :  { %v53_v17 = vpop.permute.xlu1 %52  ;;  %v43_v20 = vpop.permute.xlu0 %42 }
  0x88   :  { %v57_v24 = vmul.f32 %v43_v20, %v25_v18  ;;  %v58_v25 = vmul.f32 %v43_v20, %v26_v19  ;;  %v61_v37 = vmul.f32 %v53_v17, %v29_v27  ;;  %v62_v38 = vmul.f32 %v53_v17, %v30_v28 }
  0x8b   :  { %v71_v29 = vpop.permute.xlu1 %70  ;;  %v66_v30 = vpop.permute.xlu0 %65 }
  0x8c   :  { %v85_v31 = vadd.f32 %v71_v29, %v57_v24  ;;  %v86_v32 = vadd.f32 %v71_v29, %v58_v25  ;;  %v83_v33 = vadd.f32 %v66_v30, %v55_v22  ;;  %v84_v34 = vadd.f32 %v66_v30, %v56_v23 }
  0x8e   :  { %93 = vst [vmem:[#allocation2 + $0x10] sm:$0xff] %v85_v31  ;;  %94 = vst [vmem:[#allocation2 + $0x18] sm:$0xff] %v86_v32 }
  0x8f   :  { %91 = vst [vmem:[#allocation2] sm:$0xff] %v83_v33  ;;  %92 = vst [vmem:[#allocation2 + $0x8] sm:$0xff] %v84_v34  ;;  %v81_v39 = vpop.permute.xlu1 %80  ;;  %v76_v40 = vpop.permute.xlu0 %75 }
  0x90   :  { %v89_v41 = vadd.f32 %v81_v39, %v61_v37  ;;  %v90_v42 = vadd.f32 %v81_v39, %v62_v38  ;;  %v87_v43 = vadd.f32 %v76_v40, %v59_v35  ;;  %v88_v44 = vadd.f32 %v76_v40, %v60_v36 }
  0x92   :  { %97 = vst [vmem:[#allocation2 + $0x30] sm:$0xff] %v89_v41  ;;  %98 = vst [vmem:[#allocation2 + $0x38] sm:$0xff] %v90_v42 }
  0x93   :  { %95 = vst [vmem:[#allocation2 + $0x20] sm:$0xff] %v87_v43  ;;  %96 = vst [vmem:[#allocation2 + $0x28] sm:$0xff] %v88_v44 }
  0x94   :  { %132 = shalt.err (!%p129_p4)
}
  0x95   :  { %s133_s19 = scalar_lea.hbm %s232_s3, 1024 }
  0x96   :  { %p134_p5 = scmp.ne.s32.totalorder %s232_s3, %s133_s19  ;;  %p137_p6 = scmp.lt.u32.totalorder %s133_s19, %s232_s3 }
  0x98   :  { %p139_p7 = pnand %p137_p6, %p134_p5 }
  0x9a   :  { %142 = shalt.err (!%p139_p7)
}
  0x9b   :  { %s147_s24 = smov 256   ;;  %s148_s25 = smov 16  }
  0x9c   :  { %110 = dma.vmem_to_hbm [thread:$0]  %s105_s16, 1024, %s232_s3, [#allocation3], %s147_s24, %s147_s24, %s148_s25  }
  0x9d   :  { %143 = dma.done.wait [#allocation3], 1024  }
  0x9e   :  { %144 = vsyncadd [#allocation3], 4294966272 }
  0x9f   :  { %114 = vsyncpa [#allocation3], 1 }

</bundles_post_ra>
